<compile_context>
chip_gen: v7x
topology: tpu7x:2x2x1
jax: 0.10.0
libtpu: 0.0.40
codegen_flags: <defaults>
</compile_context>

<pallas_src>
import functools

import jax
import jax.numpy as jnp
from jax.experimental import pallas as pl
from jax.experimental.pallas import tpu as pltpu

LANES = 128
MAX_TILE_ROWS = 2048          # (2048, 128) f32 tile = 1 MiB per input per step
MAX_ACC_ROWS = 128            # resident accumulator block height (<= 64 KiB f32)


def _bsm_loss_kernel(scale_ref, x_ref, t_ref, o_ref, *,
                     tile_rows, acc_rows, n_inner, n_tiles, valid_rows,
                     needs_mask, has_overflow):
    """One grid step: loss over one (tile_rows, 128) tile, folded into o_ref.

    scale_ref : SMEM (1,) f32                       -> N_D / N_R
    x_ref, t_ref : VMEM (tile_rows, 128) tiles (native dtype)
    o_ref : VMEM (acc_rows, 128) f32 accumulator block, resident across the
            inner ("arbitrary") grid axis.
    """
    i = pl.program_id(1)

    @pl.when(i == 0)
    def _():
        o_ref[...] = jnp.zeros_like(o_ref)

    x = x_ref[...].astype(jnp.float32)
    t = t_ref[...].astype(jnp.float32)
    s = scale_ref[0]
    # Keep exp(x) - 1 (bit-parity with the PyTorch reference formula).
    val = -t * x + s * (1.0 - t) * (jnp.exp(x) - 1.0)

    def fold(v):
        # (tile_rows, 128) -> (acc_rows, 128): sublane-layout-preserving VALU
        # adds with acc_rows-row fan-out; no long serial f32 add chain.  The
        # expensive cross-lane reduce is done exactly once, outside the kernel.
        if acc_rows == 1:   # ragged single-tile fallback (rows % 8 != 0)
            return jnp.sum(v, axis=0, keepdims=True)
        return jnp.sum(v.reshape(tile_rows // acc_rows, acc_rows, LANES), axis=0)

    if not needs_mask and not has_overflow:
        # Hot path: every tile is full and valid -> zero mask/guard work.
        o_ref[...] += fold(val)
    else:
        tile_idx = pl.program_id(0) * n_inner + i
        n_full = n_tiles - 1 if needs_mask else n_tiles

        @pl.when(tile_idx < n_full)            # full, valid tiles: unmasked
        def _():
            o_ref[...] += fold(val)

        if needs_mask:
            @pl.when(tile_idx == n_tiles - 1)  # the single partial tile
            def _():
                row = jax.lax.broadcasted_iota(jnp.int32, (tile_rows, LANES), 0)
                # Select (not multiply): OOB garbage rows may hold inf/nan
                # after exp; a select still yields exactly 0 for them.
                o_ref[...] += fold(jnp.where(row < valid_rows, val, 0.0))
        # Overflow step of the 2-way split (tile_idx == n_tiles) falls through
        # both branches and contributes nothing.


def bsm_loss(inp, target, N_D, N_R):
    """Pallas TPU implementation of BSM_Loss.forward (reduction='sum').

    Inputs are streamed from HBM in their native dtypes and cast to f32 inside
    the kernel, so callers gain bandwidth by passing `input` as bf16 and/or
    `target` as bool/int8/bf16 instead of pre-cast f32.
    """
    assert inp.shape == target.shape
    scale_val = jnp.asarray(N_D, jnp.float32) / jnp.asarray(N_R, jnp.float32)

    x = inp.reshape(-1)          # free for contiguous inputs (no HBM copy)
    t = target.reshape(-1)
    total = x.size

    # Ragged tail (< 128 elements): tiny separate jnp sum instead of padding
    # (padding both full arrays costs an extra HBM read+write of everything).
    tail = total % LANES
    main = total - tail
    tail_loss = None
    if tail:
        xt = x[main:].astype(jnp.float32)
        tt = t[main:].astype(jnp.float32)
        tail_loss = jnp.sum(-tt * xt + scale_val * (1.0 - tt) * (jnp.exp(xt) - 1.0))
        if main:
            # Only the ragged case pays a head-slice copy (rare; unavoidable
            # without manual DMA).  128-aligned totals take the zero-copy path.
            x = x[:main]
            t = t[:main]
    if main == 0:
        return tail_loss if tail_loss is not None else jnp.float32(0.0)

    rows = main // LANES
    x2 = x.reshape(rows, LANES)
    t2 = t.reshape(rows, LANES)

    # Tile / grid geometry.
    tile_rows = rows if rows <= MAX_TILE_ROWS else MAX_TILE_ROWS
    n_tiles = -(-rows // tile_rows)
    needs_mask = (rows % tile_rows) != 0

    # 2-way split over the leading "parallel" axis whenever there are >= 2
    # tiles (odd counts included): each v7x TensorCore gets its own half and
    # its own accumulator block; the odd overflow step is guarded in-kernel.
    num_splits = 2 if n_tiles >= 2 else 1
    n_inner = -(-n_tiles // num_splits)
    has_overflow = num_splits * n_inner > n_tiles

    # Accumulator block height: largest 8-multiple (<= 128) dividing the tile.
    # On the multi-tile hot path tile_rows == 2048 -> acc_rows == 128.
    acc_rows = 1
    for d in (MAX_ACC_ROWS, 64, 32, 16, 8):
        if tile_rows % d == 0:
            acc_rows = d
            break

    if has_overflow:
        # Clamp so the guarded overflow step re-reads a valid tile (its
        # contribution is skipped in-kernel).
        in_map = lambda c, i: (jnp.minimum(c * n_inner + i, n_tiles - 1), 0)
    else:
        in_map = lambda c, i: (c * n_inner + i, 0)

    kernel = functools.partial(
        _bsm_loss_kernel,
        tile_rows=tile_rows, acc_rows=acc_rows, n_inner=n_inner,
        n_tiles=n_tiles, valid_rows=rows - (n_tiles - 1) * tile_rows,
        needs_mask=needs_mask, has_overflow=has_overflow)

    out = pl.pallas_call(
        kernel,
        out_shape=jax.ShapeDtypeStruct((num_splits, acc_rows, LANES), jnp.float32),
        grid=(num_splits, n_inner),
        in_specs=[
            pl.BlockSpec(memory_space=pltpu.SMEM),       # scale (1,) f32
            pl.BlockSpec((tile_rows, LANES), in_map),    # input tile (native dtype)
            pl.BlockSpec((tile_rows, LANES), in_map),    # target tile (native dtype)
        ],
        out_specs=pl.BlockSpec((None, acc_rows, LANES), lambda c, i: (c, 0, 0)),
        # TODO(synk): on v7x verify the leading axis actually shards across the
        # two TensorCores; if not, switch to (pltpu.CORE_PARALLEL,
        # pltpu.ARBITRARY) there (kept as "parallel" for portability).
        compiler_params=pltpu.CompilerParams(
            dimension_semantics=("parallel", "arbitrary"),
            vmem_limit_bytes=32 * 1024 * 1024,   # 2 in x 2 buf x 1 MiB + slack
        ),
    )(jnp.reshape(scale_val, (1,)), x2, t2)

    # Tiny final cross-lane reduce (at most 2*128*128 f32), done by XLA.
    result = jnp.sum(out)
    if tail_loss is not None:
        result = result + tail_loss
    return result


def bsm_loss_ref(inp, target, N_D, N_R):
    inp = inp.astype(jnp.float32)
    target = target.astype(jnp.float32)
    s = jnp.float32(N_D) / jnp.float32(N_R)
    return jnp.sum(-target * inp + s * (1.0 - target) * (jnp.exp(inp) - 1.0))


if __name__ == "__main__":
    key = jax.random.PRNGKey(0)
    ks = jax.random.split(key, 8)
    N_D, N_R = 100.0, 400.0

    def make(shape, k1, k2):
        inp = jax.random.normal(k1, shape, dtype=jnp.float32) * 0.5
        tgt = (jax.random.uniform(k2, shape) > 0.5).astype(jnp.float32)
        return inp, tgt

    cases = [
        # (shape, atol)
        ((2, 4, 16, 16), 1e-2),    # small single tile (primary module-like case)
        ((2, 4, 150, 160), 1e-1),  # 1500x128 slab: zero-copy path, no padding
        ((2, 4, 262, 256), 1.0),   # 4192 rows -> 3 tiles: mask + odd-count 2-way split
        ((2, 4, 15, 17), 1e-2),    # ragged total (2040 = 15*128 + 120): jnp tail path
    ]
    for idx, (shape, atol) in enumerate(cases):
        inp, tgt = make(shape, ks[2 * idx], ks[2 * idx + 1])
        out = bsm_loss(inp, tgt, N_D, N_R)
        jax.block_until_ready(out)
        ref = bsm_loss_ref(inp, tgt, N_D, N_R)
        assert jnp.allclose(out, ref, rtol=1e-3, atol=atol), (shape, out, ref)

    print("KERNEL_OK")
</pallas_src>

<mosaic_0001>
module attributes {stable_mosaic.version = 11 : i64} {
  func.func @_bsm_loss_kernel(%arg0: i32, %arg1: i32, %arg2: memref<1xf32, #tpu.memory_space<smem>>, %arg3: memref<16x128xf32, #tpu.memory_space<vmem>>, %arg4: memref<16x128xf32, #tpu.memory_space<vmem>>, %arg5: memref<1x16x128xf32, #tpu.memory_space<vmem>>) attributes {dimension_semantics = [#tpu.dimension_semantics<parallel>, #tpu.dimension_semantics<arbitrary>], iteration_bounds = array<i64: 1, 1>, scalar_prefetch = 0 : i64, scratch_operands = 0 : i64, tpu.core_type = #tpu.core_type<tc>, window_params = [{transform_indices = @transform_0, window_bounds = array<i64: 1>}, {transform_indices = @transform_1, window_bounds = array<i64: 16, 128>}, {transform_indices = @transform_2, window_bounds = array<i64: 16, 128>}, {transform_indices = @transform_3, window_bounds = array<i64: 1, 16, 128>}]} {
    %c0_i32 = arith.constant 0 : i32
    %0 = arith.cmpi eq, %arg1, %c0_i32 : i32
    %1 = arith.extui %0 : i1 to i32
    %c0_i32_0 = arith.constant 0 : i32
    %2 = arith.cmpi ne, %1, %c0_i32_0 : i32
    scf.if %2 {
      %cst_14 = arith.constant 0.000000e+00 : f32
      %26 = vector.broadcast %cst_14 : f32 to vector<16x128xf32>
      %c0_15 = arith.constant 0 : index
      %c0_16 = arith.constant 0 : index
      %c0_17 = arith.constant 0 : index
      %27 = vector.load %arg5[%c0_15, %c0_16, %c0_17] : memref<1x16x128xf32, #tpu.memory_space<vmem>>, vector<1x16x128xf32>
      %28 = vector.shape_cast %27 : vector<1x16x128xf32> to vector<16x128xf32>
      %29 = vector.shape_cast %26 : vector<16x128xf32> to vector<1x16x128xf32>
      tpu.vector_store %arg5[%c0_15, %c0_16, %c0_17], %29 {strides = array<i32>} : memref<1x16x128xf32, #tpu.memory_space<vmem>>, vector<1x16x128xf32>,
    } else {
    }
    %c0 = arith.constant 0 : index
    %c0_1 = arith.constant 0 : index
    %3 = vector.load %arg3[%c0, %c0_1] : memref<16x128xf32, #tpu.memory_space<vmem>>, vector<16x128xf32>
    %c0_2 = arith.constant 0 : index
    %c0_3 = arith.constant 0 : index
    %4 = vector.load %arg4[%c0_2, %c0_3] : memref<16x128xf32, #tpu.memory_space<vmem>>, vector<16x128xf32>
    %c0_4 = arith.constant 0 : index
    %5 = memref.load %arg2[%c0_4] : memref<1xf32, #tpu.memory_space<smem>>
    %cst = arith.constant 0.000000e+00 : f32
    %6 = vector.broadcast %cst : f32 to vector<16x128xf32>
    %7 = arith.subf %6, %4 : vector<16x128xf32>
    %8 = arith.mulf %7, %3 : vector<16x128xf32>
    %cst_5 = arith.constant 1.000000e+00 : f32
    %9 = vector.broadcast %cst_5 : f32 to vector<16x128xf32>
    %10 = arith.subf %9, %4 : vector<16x128xf32>
    %11 = vector.broadcast %5 : f32 to vector<16x128xf32>
    %12 = arith.mulf %11, %10 : vector<16x128xf32>
    %13 = math.exp %3 : vector<16x128xf32>
    %cst_6 = arith.constant 1.000000e+00 : f32
    %14 = vector.broadcast %cst_6 : f32 to vector<16x128xf32>
    %15 = arith.subf %13, %14 : vector<16x128xf32>
    %16 = arith.mulf %12, %15 : vector<16x128xf32>
    %17 = arith.addf %8, %16 : vector<16x128xf32>
    %c0_7 = arith.constant 0 : index
    %c0_8 = arith.constant 0 : index
    %c0_9 = arith.constant 0 : index
    %18 = vector.load %arg5[%c0_7, %c0_8, %c0_9] : memref<1x16x128xf32, #tpu.memory_space<vmem>>, vector<1x16x128xf32>
    %19 = vector.shape_cast %18 : vector<1x16x128xf32> to vector<16x128xf32>
    %20 = vector.shape_cast %17 : vector<16x128xf32> to vector<1x16x128xf32>
    %cst_10 = arith.constant dense<0.000000e+00> : vector<16x128xf32>
    %21 = vector.multi_reduction <add>, %20, %cst_10 [0] : vector<1x16x128xf32> to vector<16x128xf32>
    %22 = arith.addf %19, %21 : vector<16x128xf32>
    %c0_11 = arith.constant 0 : index
    %c0_12 = arith.constant 0 : index
    %c0_13 = arith.constant 0 : index
    %23 = vector.load %arg5[%c0_11, %c0_12, %c0_13] : memref<1x16x128xf32, #tpu.memory_space<vmem>>, vector<1x16x128xf32>
    %24 = vector.shape_cast %23 : vector<1x16x128xf32> to vector<16x128xf32>
    %25 = vector.shape_cast %22 : vector<16x128xf32> to vector<1x16x128xf32>
    tpu.vector_store %arg5[%c0_11, %c0_12, %c0_13], %25 {strides = array<i32>} : memref<1x16x128xf32, #tpu.memory_space<vmem>>, vector<1x16x128xf32>,
    return
  }
  func.func @transform_0(%arg0: i32, %arg1: i32) -> i32 {
    %c0_i32 = arith.constant 0 : i32
    %c0_i32_0 = arith.constant 0 : i32
    return %c0_i32 : i32
  }
  func.func @transform_1(%arg0: i32, %arg1: i32) -> (i32, i32) {
    %c1_i32 = arith.constant 1 : i32
    %0 = arith.muli %arg0, %c1_i32 : i32
    %1 = arith.addi %0, %arg1 : i32
    %c0_i32 = arith.constant 0 : i32
    %c0_i32_0 = arith.constant 0 : i32
    return %1, %c0_i32 : i32, i32
  }
  func.func @transform_2(%arg0: i32, %arg1: i32) -> (i32, i32) {
    %c1_i32 = arith.constant 1 : i32
    %0 = arith.muli %arg0, %c1_i32 : i32
    %1 = arith.addi %0, %arg1 : i32
    %c0_i32 = arith.constant 0 : i32
    %c0_i32_0 = arith.constant 0 : i32
    return %1, %c0_i32 : i32, i32
  }
  func.func @transform_3(%arg0: i32, %arg1: i32) -> (i32, i32, i32) {
    %c0_i32 = arith.constant 0 : i32
    %c0_i32_0 = arith.constant 0 : i32
    %c0_i32_1 = arith.constant 0 : i32
    return %arg0, %c0_i32, %c0_i32_0 : i32, i32, i32
  }
}

</mosaic_0001>

<bundles_post_ra>
// kernel: tpu_custom_call.1
= control target key start
LH: loop header
LB: loop body
LE: loop exit
PB: predicated region body
PF: predicated region fallthrough
CT: control target
= control target key end

     0   :  { %9 = vsyncpa [#allocation4], 0  ;;  %s269_s0 = inlined_call_operand.<no memory space> [shape: f32[1], index: 0, kind: input, shape index: {}]   ;;  %s270_s1 = inlined_call_operand.hbm [shape: f32[16,128], index: 1, kind: input, shape index: {}]   ;;  %s271_s2 = inlined_call_operand.hbm [shape: f32[16,128], index: 2, kind: input, shape index: {}]   ;;  %s272_s3 = inlined_call_operand.hbm [shape: f32[1,16,128], index: 3, kind: output, shape index: {}]  }
   0x1   :  { %10 = vsyncpa [#allocation7], 0 }
   0x2   :  { %11 = vsyncpa [#allocation5], 0  ;;  %s196_s12 = smov [#allocation3]   ;;  %s124_s16 = scalar_lea.hbm %s270_s1, 256 }
   0x3   :  { %s23_s13 = sshll.u32 %s196_s12, 4  ;;  %p125_p0 = scmp.ne.s32.totalorder %s270_s1, %s124_s16  ;;  %s24_s13 = int_to_ptr.vmem [resolvable:$true] %s23_s13 }
   0x4   :  { %p128_p1 = scmp.lt.u32.totalorder %s124_s16, %s270_s1 }
   0x6   :  { %p130_p2 = pnand %p128_p1, %p125_p0 }
   0x8   :  { %133 = shalt.err (!%p130_p2)
}
   0x9   :  { %s134_s21 = scalar_lea.vmem %s24_s13, 256  ;;  %p139_p4 = scmp.lt.s32.totalorder %s24_s13, %s24_s13 }
   0xa   :  { %p135_p3 = scmp.ne.s32.totalorder %s24_s13, %s134_s21  ;;  %p140_p5 = scmp.lt.s32.totalorder %s134_s21, %s134_s21 }
   0xc   :  { %p141_p6 = por %p140_p5, %p139_p4 }
   0xe   :  { %p142_p7 = pnand %p141_p6, %p135_p3 }
  0x10   :  { %145 = shalt.err (!%p142_p7)
}
  0x11   :  { %s197_s22 = smov 128   ;;  %s198_s23 = smov 8  }
  0x12   :  { %29 = dma.hbm_to_vmem [thread:$0]  %s270_s1, 256, %s24_s13, [#allocation4], %s197_s22, %s197_s22, %s198_s23  }
  0x13   :  { %s199_s26 = smov [#allocation6]   ;;  %s146_s30 = scalar_lea.hbm %s271_s2, 256 }
  0x14   :  { %s39_s27 = sshll.u32 %s199_s26, 4  ;;  %p147_p8 = scmp.ne.s32.totalorder %s271_s2, %s146_s30  ;;  %s40_s27 = int_to_ptr.vmem [resolvable:$true] %s39_s27 }
  0x15   :  { %p150_p9 = scmp.lt.u32.totalorder %s146_s30, %s271_s2 }
  0x17   :  { %p152_p10 = pnand %p150_p9, %p147_p8 }
  0x19   :  { %155 = shalt.err (!%p152_p10)
}
  0x1a   :  { %s156_s8 = scalar_lea.vmem %s40_s27, 256  ;;  %p161_p12 = scmp.lt.s32.totalorder %s40_s27, %s40_s27 }
  0x1b   :  { %p157_p11 = scmp.ne.s32.totalorder %s40_s27, %s156_s8  ;;  %p162_p13 = scmp.lt.s32.totalorder %s156_s8, %s156_s8 }
  0x1d   :  { %p163_p0 = por %p162_p13, %p161_p12 }
  0x1f   :  { %p164_p1 = pnand %p163_p0, %p157_p11 }
  0x21   :  { %167 = shalt.err (!%p164_p1)
}
  0x22   :  { %45 = dma.hbm_to_vmem [thread:$0]  %s271_s2, 256, %s40_s27, [#allocation7], %s197_s22, %s197_s22, %s198_s23  }
  0x23   :  { %190 = dma.done.wait [#allocation4], 256  }
  0x24   :  { %191 = vsyncadd [#allocation4], 4294967040 }
  0x25   :  { %192 = dma.done.wait [#allocation7], 256  }
  0x26   :  { %193 = vsyncadd [#allocation7], 4294967040  ;;  %v62_v0 = vld [vmem:[#allocation3] sm:$0xff]  ;;  %v63_v1 = vld [vmem:[#allocation3 + $0x8] sm:$0xff]  ;;  %v73_v7 = vstv %s269_s0  ;;  %s200_s2 = smov [#allocation8]  }
  0x27   :  { %v76_v2 = vmul.f32 1.442695, %v62_v0  ;;  %v78_v3 = vmul.f32 1.442695, %v63_v1  ;;  %v64_v4 = vld [vmem:[#allocation6] sm:$0xff]  ;;  %v65_v5 = vld [vmem:[#allocation6 + $0x8] sm:$0xff] }
  0x28   :  { %v71_v6 = vsub.f32 1.0, %v64_v4  ;;  %v72_v8 = vsub.f32 1.0, %v65_v5  ;;  %v67_v9 = vsub.f32 0.0, %v64_v4  ;;  %v68_v10 = vsub.f32 0.0, %v65_v5  ;;  %s99_s12 = sshll.u32 %s200_s2, 4  ;;  %s100_s12 = int_to_ptr.vmem [resolvable:$true] %s99_s12 }
  0x29   :  { %120 = vpow2.f32 %v76_v2  ;;  %s168_s0 = scalar_lea.vmem %s100_s12, 256  ;;  %p173_p3 = scmp.lt.s32.totalorder %s100_s12, %s100_s12 }
  0x2a   :  { %122 = vpow2.f32 %v78_v3  ;;  %v74_v11 = vmul.f32 %v73_v7, %v71_v6  ;;  %v75_v13 = vmul.f32 %v73_v7, %v72_v8  ;;  %v69_v15 = vmul.f32 %v67_v9, %v62_v0  ;;  %p169_p2 = scmp.ne.s32.totalorder %s100_s12, %s168_s0  ;;  %p174_p4 = scmp.lt.s32.totalorder %s168_s0, %s168_s0 }
  0x2b   :  { %v70_v17 = vmul.f32 %v68_v10, %v63_v1 }
  0x2c   :  { %p175_p5 = por %p174_p4, %p173_p3 }
  0x2e   :  { %p176_p6 = pnand %p175_p5, %p169_p2 }
  0x33   :  { %v121_v12 = vpop.eup %120 }
  0x34   :  { %v123_v14 = vpop.eup %122  ;;  %v112_v16 = vadd.f32 -1.0, %v121_v12 }
  0x35   :  { %v113_v18 = vadd.f32 -1.0, %v123_v14 }
  0x36   :  { %v82_v19 = vmul.f32 %v112_v16, %v74_v11 }
  0x37   :  { %v83_v20 = vmul.f32 %v113_v18, %v75_v13 }
  0x38   :  { %v84_v21 = vadd.f32 %v82_v19, %v69_v15 }
  0x39   :  { %v85_v22 = vadd.f32 %v83_v20, %v70_v17 }
  0x3a   :  { %92 = vst [vmem:[#allocation8] sm:$0xff] %v84_v21 }
  0x3b   :  { %93 = vst [vmem:[#allocation8 + $0x8] sm:$0xff] %v85_v22 }
  0x3c   :  { %179 = shalt.err (!%p176_p6)
}
  0x3d   :  { %s180_s15 = scalar_lea.hbm %s272_s3, 256 }
  0x3e   :  { %p181_p7 = scmp.ne.s32.totalorder %s272_s3, %s180_s15  ;;  %p184_p8 = scmp.lt.u32.totalorder %s180_s15, %s272_s3 }
  0x40   :  { %p186_p9 = pnand %p184_p8, %p181_p7 }
  0x42   :  { %189 = shalt.err (!%p186_p9)
}
  0x43   :  { %105 = dma.vmem_to_hbm [thread:$0]  %s100_s12, 256, %s272_s3, [#allocation5], %s197_s22, %s197_s22, %s198_s23  }
  0x44   :  { %194 = dma.done.wait [#allocation5], 256  }
  0x45   :  { %195 = vsyncadd [#allocation5], 4294967040 }
  0x46   :  { %109 = vsyncpa [#allocation4], 1 }
  0x47   :  { %110 = vsyncpa [#allocation7], 1 }
  0x48   :  { %111 = vsyncpa [#allocation5], 1 }

</bundles_post_ra>
